<compile_context>
chip_gen: v5e
topology: v5e:2x2
jax: 0.10.0
libtpu: 0.0.40
codegen_flags: <defaults>
</compile_context>

<pallas_src>
import jax
import jax.numpy as jnp
from jax.experimental import pallas as pl
from jax.experimental.pallas import tpu as pltpu


def _round_up(x, m):
    return (x + m - 1) // m * m


def _audio_att_kernel(aud_ref, vid_ref,
                      wa_ref, ba_ref,
                      wv12_ref, bv12_ref,
                      out_ref):
    D = out_ref.shape[-1]

    aud = aud_ref[...]
    vid = vid_ref[...]

    # Audio branch: [bb, D] @ [D, D] on the MXU, f32 accumulation.
    y_aud = jnp.dot(aud, wa_ref[...],
                    preferred_element_type=jnp.float32) + ba_ref[...]

    # Fused video branch: one MXU launch with N = 2D instead of two with N = D.
    yv = jnp.dot(vid, wv12_ref[...],
                 preferred_element_type=jnp.float32) + bv12_ref[...]
    y_vid = yv[:, :D]
    x_vid = yv[:, D:]

    # Gate + numerically-stable softmax over the feature (lane) axis, in f32.
    we = y_aud * y_vid
    we = we - jnp.max(we, axis=-1, keepdims=True)          # XLU reduce
    e = jnp.exp(we)                                        # EUP
    denom = jnp.sum(e, axis=-1, keepdims=True)             # XLU reduce
    we = e * pl.reciprocal(denom, approx=True)             # EUP vrcp

    out_ref[...] = (we * x_vid).astype(out_ref.dtype)


def audio_att_net1(audio_emb, video_emb, params, *,
                   block_b=512, compute_dtype=jnp.bfloat16):
    """Fused AudioAttNet1 forward.

    audio_emb: [B, dim_aud]   video_emb: [B, dim_video]  (dim_aud == dim_video)
    params: dict with wa_t/ba/wv1_t/bv1/wv2_t/bv2 (weights pre-transposed
            [D_in, D_out], f32 master copies).
    block_b: rows per grid step (512 default; sweep 256 on v5e).
    compute_dtype: MXU input dtype (bf16 recommended; f32 supported).
    """
    B, D = audio_emb.shape
    assert video_emb.shape == (B, D)
    assert D % 128 == 0, "feature dim must be lane-aligned (multiple of 128)"
    out_dtype = audio_emb.dtype

    # Sublane tile: (16,128) for bf16 blocks, (8,128) for f32 blocks.
    sub = 16 if jnp.dtype(compute_dtype) == jnp.dtype(jnp.bfloat16) else 8
    bb = max(sub, min(_round_up(block_b, sub), _round_up(B, sub)))
    Bp = _round_up(B, bb)

    aud = audio_emb.astype(compute_dtype)
    vid = video_emb.astype(compute_dtype)
    if Bp != B:
        pad = ((0, Bp - B), (0, 0))
        aud = jnp.pad(aud, pad)    # pad rows give harmless softmax rows, sliced off
        vid = jnp.pad(vid, pad)

    # Low-precision MXU weights (f32 accumulation inside the kernel);
    # the two video projections are concatenated along the output dim.
    wa = params["wa_t"].astype(compute_dtype)                              # [D, D]
    wv12 = jnp.concatenate([params["wv1_t"], params["wv2_t"]], axis=1
                           ).astype(compute_dtype)                         # [D, 2D]
    ba = params["ba"].astype(jnp.float32)                                  # [1, D]
    bv12 = jnp.concatenate([params["bv1"], params["bv2"]], axis=1
                           ).astype(jnp.float32)                           # [1, 2D]

    grid = (Bp // bb,)

    act_spec = pl.BlockSpec((bb, D), lambda i: (i, 0))
    out_spec = pl.BlockSpec((bb, D), lambda i: (i, 0))
    # Grid-invariant weights: constant index_map -> fetched once per core.
    wa_spec = pl.BlockSpec((D, D), lambda i: (0, 0))
    ba_spec = pl.BlockSpec((1, D), lambda i: (0, 0))
    wv_spec = pl.BlockSpec((D, 2 * D), lambda i: (0, 0))
    bv_spec = pl.BlockSpec((1, 2 * D), lambda i: (0, 0))

    itm = jnp.dtype(compute_dtype).itemsize
    bytes_accessed = (
        (wa.size + wv12.size) * itm                      # weights
        + (ba.size + bv12.size) * 4                      # biases (f32)
        + 2 * Bp * D * itm                               # two activation inputs
        + Bp * D * jnp.dtype(out_dtype).itemsize)        # output
    cost = pl.CostEstimate(
        flops=2 * Bp * D * (3 * D),      # three DxD matmuls worth of MACs
        transcendentals=Bp * D,          # exp in softmax
        bytes_accessed=bytes_accessed)

    out = pl.pallas_call(
        _audio_att_kernel,
        out_shape=jax.ShapeDtypeStruct((Bp, D), out_dtype),
        grid_spec=pltpu.PrefetchScalarGridSpec(
            num_scalar_prefetch=0,
            grid=grid,
            in_specs=[
                act_spec,            # audio_emb
                act_spec,            # video_emb
                wa_spec, ba_spec,    # audioNet
                wv_spec, bv_spec,    # videoNet1 | videoNet2 fused
            ],
            out_specs=out_spec,
        ),
        compiler_params=pltpu.CompilerParams(
            dimension_semantics=("parallel",)),   # batch axis shards across TCs (v7x)
        cost_estimate=cost,
    )(aud, vid, wa, ba, wv12, bv12)

    return out[:B] if Bp != B else out


def init_params(key, dim_aud=256, dim_video=256, dtype=jnp.float32):
    """Deterministic nn.Linear-style init (uniform(-1/sqrt(fan_in), 1/sqrt(fan_in)))."""
    ks = jax.random.split(key, 6)

    def lin(kw, kb, d_in, d_out):
        bound = 1.0 / (d_in ** 0.5)
        w = jax.random.uniform(kw, (d_out, d_in), dtype, -bound, bound)
        b = jax.random.uniform(kb, (d_out,), dtype, -bound, bound)
        return w, b

    wa, ba = lin(ks[0], ks[1], dim_aud, dim_aud)
    wv1, bv1 = lin(ks[2], ks[3], dim_video, dim_video)
    wv2, bv2 = lin(ks[4], ks[5], dim_video, dim_video)
    return {
        # stored transposed so the kernel does x @ W_t  ==  x @ W.T (torch)
        "wa_t": wa.T,   "ba": ba.reshape(1, -1),
        "wv1_t": wv1.T, "bv1": bv1.reshape(1, -1),
        "wv2_t": wv2.T, "bv2": bv2.reshape(1, -1),
    }


def _reference(audio_emb, video_emb, params):
    y_aud = audio_emb @ params["wa_t"] + params["ba"]
    y_vid = video_emb @ params["wv1_t"] + params["bv1"]
    we = jax.nn.softmax(y_aud * y_vid, axis=1)
    x_vid = video_emb @ params["wv2_t"] + params["bv2"]
    return we * x_vid


if __name__ == "__main__":
    key = jax.random.PRNGKey(0)
    k_p, k_a, k_v = jax.random.split(key, 3)

    # Module defaults: dim_aud = dim_video = 256; small batch for the demo.
    # NOTE: for real workloads (one B=8 call per frame), batch many frames into
    # a single call so block_b=256/512 and the weight residency actually pay off.
    B, D = 8, 256
    params = init_params(k_p, dim_aud=D, dim_video=D)
    audio_emb = jax.random.normal(k_a, (B, D), jnp.float32)
    video_emb = jax.random.normal(k_v, (B, D), jnp.float32)

    out = audio_att_net1(audio_emb, video_emb, params,
                         block_b=512, compute_dtype=jnp.bfloat16)
    out = jax.block_until_ready(out)

    ref = _reference(audio_emb, video_emb, params)
    assert out.shape == (B, D)
    # bf16 MXU inputs + approx reciprocal -> compare against f32 ref with a
    # correspondingly looser tolerance.
    assert jnp.allclose(out, ref, atol=2e-2, rtol=2e-2), "mismatch vs reference"

    print("KERNEL_OK")
</pallas_src>

<mosaic_0001>
module attributes {stable_mosaic.version = 11 : i64} {
  func.func @_audio_att_kernel(%arg0: i32, %arg1: memref<16x256xbf16, #tpu.memory_space<vmem>>, %arg2: memref<16x256xbf16, #tpu.memory_space<vmem>>, %arg3: memref<256x256xbf16, #tpu.memory_space<vmem>>, %arg4: memref<1x256xf32, #tpu.memory_space<vmem>>, %arg5: memref<256x512xbf16, #tpu.memory_space<vmem>>, %arg6: memref<1x512xf32, #tpu.memory_space<vmem>>, %arg7: memref<16x256xf32, #tpu.memory_space<vmem>>) attributes {dimension_semantics = [#tpu.dimension_semantics<parallel>], iteration_bounds = array<i64: 1>, scalar_prefetch = 0 : i64, scratch_operands = 0 : i64, tpu.core_type = #tpu.core_type<tc>, window_params = [{transform_indices = @transform_0, window_bounds = array<i64: 16, 256>}, {transform_indices = @transform_1, window_bounds = array<i64: 16, 256>}, {pipeline_mode = #tpu.pipeline_mode<synchronous>, transform_indices = @transform_2, window_bounds = array<i64: 256, 256>}, {pipeline_mode = #tpu.pipeline_mode<synchronous>, transform_indices = @transform_3, window_bounds = array<i64: 1, 256>}, {pipeline_mode = #tpu.pipeline_mode<synchronous>, transform_indices = @transform_4, window_bounds = array<i64: 256, 512>}, {pipeline_mode = #tpu.pipeline_mode<synchronous>, transform_indices = @transform_5, window_bounds = array<i64: 1, 512>}, {transform_indices = @transform_6, window_bounds = array<i64: 16, 256>}]} {
    %c0 = arith.constant 0 : index
    %c0_0 = arith.constant 0 : index
    %0 = vector.load %arg1[%c0, %c0_0] : memref<16x256xbf16, #tpu.memory_space<vmem>>, vector<16x256xbf16>
    %c0_1 = arith.constant 0 : index
    %c0_2 = arith.constant 0 : index
    %1 = vector.load %arg2[%c0_1, %c0_2] : memref<16x256xbf16, #tpu.memory_space<vmem>>, vector<16x256xbf16>
    %c0_3 = arith.constant 0 : index
    %c0_4 = arith.constant 0 : index
    %2 = vector.load %arg3[%c0_3, %c0_4] : memref<256x256xbf16, #tpu.memory_space<vmem>>, vector<256x256xbf16>
    %cst = arith.constant dense<0.000000e+00> : vector<16x256xf32>
    %3 = tpu.matmul %0, %2, %cst {dimension_numbers = #tpu.dot_dimension_numbers<[1], [0], [0], [1], [0, 0, 1, 1], [], []>} : vector<16x256xbf16>, vector<256x256xbf16>, vector<16x256xf32> -> vector<16x256xf32>
    %c0_5 = arith.constant 0 : index
    %c0_6 = arith.constant 0 : index
    %4 = vector.load %arg4[%c0_5, %c0_6] : memref<1x256xf32, #tpu.memory_space<vmem>>, vector<1x256xf32>
    %5 = vector.broadcast %4 : vector<1x256xf32> to vector<16x256xf32>
    %6 = arith.addf %3, %5 : vector<16x256xf32>
    %c0_7 = arith.constant 0 : index
    %c0_8 = arith.constant 0 : index
    %7 = vector.load %arg5[%c0_7, %c0_8] : memref<256x512xbf16, #tpu.memory_space<vmem>>, vector<256x512xbf16>
    %cst_9 = arith.constant dense<0.000000e+00> : vector<16x512xf32>
    %8 = tpu.matmul %1, %7, %cst_9 {dimension_numbers = #tpu.dot_dimension_numbers<[1], [0], [0], [1], [0, 0, 1, 1], [], []>} : vector<16x256xbf16>, vector<256x512xbf16>, vector<16x512xf32> -> vector<16x512xf32>
    %c0_10 = arith.constant 0 : index
    %c0_11 = arith.constant 0 : index
    %9 = vector.load %arg6[%c0_10, %c0_11] : memref<1x512xf32, #tpu.memory_space<vmem>>, vector<1x512xf32>
    %10 = vector.broadcast %9 : vector<1x512xf32> to vector<16x512xf32>
    %11 = arith.addf %8, %10 : vector<16x512xf32>
    %12 = vector.extract_strided_slice %11 {offsets = [0, 0], sizes = [16, 256], strides = [1, 1]} : vector<16x512xf32> to vector<16x256xf32>
    %13 = vector.extract_strided_slice %11 {offsets = [0, 256], sizes = [16, 256], strides = [1, 1]} : vector<16x512xf32> to vector<16x256xf32>
    %14 = arith.mulf %6, %12 : vector<16x256xf32>
    %cst_12 = arith.constant dense<0xFF800000> : vector<16xf32>
    %15 = vector.multi_reduction <maximumf>, %14, %cst_12 [1] : vector<16x256xf32> to vector<16xf32>
    %16 = vector.shape_cast %15 : vector<16xf32> to vector<16x1xf32>
    %17 = vector.broadcast %16 : vector<16x1xf32> to vector<16x256xf32>
    %18 = arith.subf %14, %17 : vector<16x256xf32>
    %19 = math.exp %18 : vector<16x256xf32>
    %cst_13 = arith.constant dense<0.000000e+00> : vector<16xf32>
    %20 = vector.multi_reduction <add>, %19, %cst_13 [1] : vector<16x256xf32> to vector<16xf32>
    %21 = vector.shape_cast %20 : vector<16xf32> to vector<16x1xf32>
    %22 = tpu.reciprocal %21 {approx = true} : vector<16x1xf32> -> vector<16x1xf32>
    %23 = vector.broadcast %22 : vector<16x1xf32> to vector<16x256xf32>
    %24 = arith.mulf %19, %23 : vector<16x256xf32>
    %25 = arith.mulf %24, %13 : vector<16x256xf32>
    %c0_14 = arith.constant 0 : index
    %c0_15 = arith.constant 0 : index
    %26 = vector.load %arg7[%c0_14, %c0_15] : memref<16x256xf32, #tpu.memory_space<vmem>>, vector<16x256xf32>
    tpu.vector_store %arg7[%c0_14, %c0_15], %25 {strides = array<i32>} : memref<16x256xf32, #tpu.memory_space<vmem>>, vector<16x256xf32>,
    return
  }
  func.func @transform_0(%arg0: i32) -> (i32, i32) {
    %c0_i32 = arith.constant 0 : i32
    %c0_i32_0 = arith.constant 0 : i32
    return %arg0, %c0_i32 : i32, i32
  }
  func.func @transform_1(%arg0: i32) -> (i32, i32) {
    %c0_i32 = arith.constant 0 : i32
    %c0_i32_0 = arith.constant 0 : i32
    return %arg0, %c0_i32 : i32, i32
  }
  func.func @transform_2(%arg0: i32) -> (i32, i32) {
    %c0_i32 = arith.constant 0 : i32
    %c0_i32_0 = arith.constant 0 : i32
    %c0_i32_1 = arith.constant 0 : i32
    return %c0_i32, %c0_i32_0 : i32, i32
  }
  func.func @transform_3(%arg0: i32) -> (i32, i32) {
    %c0_i32 = arith.constant 0 : i32
    %c0_i32_0 = arith.constant 0 : i32
    %c0_i32_1 = arith.constant 0 : i32
    return %c0_i32, %c0_i32_0 : i32, i32
  }
  func.func @transform_4(%arg0: i32) -> (i32, i32) {
    %c0_i32 = arith.constant 0 : i32
    %c0_i32_0 = arith.constant 0 : i32
    %c0_i32_1 = arith.constant 0 : i32
    return %c0_i32, %c0_i32_0 : i32, i32
  }
  func.func @transform_5(%arg0: i32) -> (i32, i32) {
    %c0_i32 = arith.constant 0 : i32
    %c0_i32_0 = arith.constant 0 : i32
    %c0_i32_1 = arith.constant 0 : i32
    return %c0_i32, %c0_i32_0 : i32, i32
  }
  func.func @transform_6(%arg0: i32) -> (i32, i32) {
    %c0_i32 = arith.constant 0 : i32
    %c0_i32_0 = arith.constant 0 : i32
    return %arg0, %c0_i32 : i32, i32
  }
}

</mosaic_0001>

<bundles_post_ra>
// kernel: tpu_custom_call.1
= control target key start
LH: loop header
LB: loop body
LE: loop exit
PB: predicated region body
PF: predicated region fallthrough
CT: control target
= control target key end

     0   :  { %11 = vsyncpa [#allocation3], 0  ;;  %s1763_s0 = inlined_call_operand.hbm [shape: bf16[16,256], index: 0, kind: input, shape index: {}]   ;;  %s1764_s1 = inlined_call_operand.hbm [shape: bf16[16,256], index: 1, kind: input, shape index: {}]   ;;  %s1765_s2 = inlined_call_operand.hbm [shape: bf16[256,256], index: 2, kind: input, shape index: {}]   ;;  %s1766_s3 = inlined_call_operand.hbm [shape: f32[1,256], index: 3, kind: input, shape index: {}]   ;;  %s1767_s4 = inlined_call_operand.hbm [shape: bf16[256,512], index: 4, kind: input, shape index: {}]   ;;  %s1768_s5 = inlined_call_operand.vmem [shape: f32[1,512], index: 5, kind: input, shape index: {}]   ;;  %s1769_s6 = inlined_call_operand.hbm [shape: f32[16,256], index: 6, kind: output, shape index: {}]  }
   0x1   :  { %12 = vsyncpa [#allocation6], 0 }
   0x2   :  { %13 = vsyncpa [#allocation9], 0 }
   0x3   :  { %14 = vsyncpa [#allocation4], 0  ;;  %s32_s23 = sshll.u32 %s1764_s1, 4  ;;  %s1621_s24 = smov [#allocation5]   ;;  %s33_s23 = int_to_ptr.hbm [resolvable:$true] %s32_s23 }
   0x4   :  { %s34_s25 = sshll.u32 %s1621_s24, 4  ;;  %s59_s28 = sshll.u32 %s1766_s3, 4  ;;  %s35_s25 = int_to_ptr.vmem [resolvable:$true] %s34_s25  ;;  %s60_s28 = int_to_ptr.hbm [resolvable:$true] %s59_s28 }
   0x5   :  { %s1622_s29 = smov 128   ;;  %s1623_s30 = smov 8  }
   0x6   :  { %40 = dma.hbm_to_vmem [thread:$0]  %s33_s23, 256, %s35_s25, [#allocation6], %s1622_s29, %s1622_s29, %s1623_s30  }
   0x7   :  { %s1624_s7 = smov [#allocation8]   ;;  %s19_s11 = sshll.u32 %s1763_s0, 4  ;;  %s20_s11 = int_to_ptr.hbm [resolvable:$true] %s19_s11 }
   0x8   :  { %s61_s8 = sshll.u32 %s1624_s7, 4  ;;  %s45_s13 = sshll.u32 %s1765_s2, 4  ;;  %s62_s8 = int_to_ptr.vmem [resolvable:$true] %s61_s8  ;;  %s46_s13 = int_to_ptr.hbm [resolvable:$true] %s45_s13 }
   0x9   :  { %64 = dma.hbm_to_vmem [thread:$0]  %s60_s28, 32, %s62_s8, [#allocation9]  }
   0xa   :  { %s1625_s14 = smov [#allocation2]   ;;  %s1626_s3 = smov [#allocation7]  }
   0xb   :  { %s21_s15 = sshll.u32 %s1625_s14, 4  ;;  %s47_s16 = sshll.u32 %s1626_s3, 4  ;;  %s22_s15 = int_to_ptr.vmem [resolvable:$true] %s21_s15  ;;  %s48_s16 = int_to_ptr.vmem [resolvable:$true] %s47_s16 }
   0xc   :  { %27 = dma.hbm_to_vmem [thread:$0]  %s20_s11, 256, %s22_s15, [#allocation3], %s1622_s29, %s1622_s29, %s1623_s30  }
   0xd   :  { %s69_s19 = sshll.u32 %s1767_s4, 4  ;;  %s1627_s0 = smov [#allocation10]   ;;  %s70_s19 = int_to_ptr.hbm [resolvable:$true] %s69_s19 }
   0xe   :  { %53 = dma.hbm_to_vmem [thread:$0]  %s46_s13, 4096, %s48_s16, [#allocation6], %s1622_s29, %s1622_s29, %s1623_s30  }
   0xf   :  { %s71_s20 = sshll.u32 %s1627_s0, 4  ;;  %s1628_s21 = smov 256   ;;  %s72_s20 = int_to_ptr.vmem [resolvable:$true] %s71_s20 }
  0x10   :  { %s1629_s22 = smov 16  }
  0x11   :  { %77 = dma.hbm_to_vmem [thread:$0]  %s70_s19, 8192, %s72_s20, [#allocation9], %s1628_s21, %s1628_s21, %s1629_s22  }
  0x12   :  { %1613 = dma.done.wait [#allocation3], 256  }
  0x13   :  { %1614 = vsyncadd [#allocation3], 4294967040 }
  0x14   :  { %1615 = dma.done.wait [#allocation6], 4352  }
  0x15   :  { %1616 = vsyncadd [#allocation6], 4294962944 }
  0x16   :  { %1617 = dma.done.wait [#allocation9], 8224  }
  0x17   :  { %1618 = vsyncadd [#allocation9], 4294959072  ;;  %v1013_v0 = vld [vmem:[#allocation7 + $0x70] sm:$0xf]  ;;  %v1366_v1 = vld [vmem:[#allocation7 + $0x74] sm:$0xf0] }
  0x18   :  { %v1077_v2 = vld [vmem:[#allocation7 + $0xf0] sm:$0xf]  ;;  %v1014_v3 = vor.u32 %v1366_v1, %v1013_v0  ;;  %v1382_v4 = vld [vmem:[#allocation7 + $0xf4] sm:$0xf0]  ;;  %v1365_v5 = vld [vmem:[#allocation7 + $0x74] sm:$0xf] }
  0x19   :  { %v1015_v6 = vld [vmem:[#allocation7 + $0x78] sm:$0xf0]  ;;  %v1078_v7 = vor.u32 %v1382_v4, %v1077_v2  ;;  %v1381_v9 = vld [vmem:[#allocation7 + $0xf4] sm:$0xf]  ;;  %v1005_v11 = vld [vmem:[#allocation7 + $0x60] sm:$0xf] }
  0x1a   :  { %v1018_v8 = vor.u32 %v1365_v5, %v1015_v6  ;;  %v1079_v10 = vld [vmem:[#allocation7 + $0xf8] sm:$0xf0]  ;;  %312 = vmatpush.bf16.msra.mxu0 %v1014_v3  ;;  %v1364_v13 = vld [vmem:[#allocation7 + $0x64] sm:$0xf0]  ;;  %v1069_v14 = vld [vmem:[#allocation7 + $0xe0] sm:$0xf] }
  0x1b   :  { %v1082_v12 = vor.u32 %v1381_v9, %v1079_v10  ;;  %v1380_v15 = vld [vmem:[#allocation7 + $0xe4] sm:$0xf0]  ;;  %326 = vmatpush.bf16.msra.mxu1 %v1078_v7  ;;  %v1006_v16 = vor.u32 %v1364_v13, %v1005_v11  ;;  %v1363_v18 = vld [vmem:[#allocation7 + $0x64] sm:$0xf]  ;;  %v1007_v19 = vld [vmem:[#allocation7 + $0x68] sm:$0xf0] }
  0x1c   :  { %340 = vmatpush.bf16.msra.mxu2 %v1018_v8  ;;  %v1070_v17 = vor.u32 %v1380_v15, %v1069_v14  ;;  %v1379_v20 = vld [vmem:[#allocation7 + $0xe4] sm:$0xf]  ;;  %v1010_v21 = vor.u32 %v1363_v18, %v1007_v19  ;;  %v1071_v22 = vld [vmem:[#allocation7 + $0xe8] sm:$0xf0]  ;;  %v997_v23 = vld [vmem:[#allocation7 + $0x50] sm:$0xf] }
  0x1d   :  { %354 = vmatpush.bf16.msra.mxu3 %v1082_v12  ;;  %v1362_v24 = vld [vmem:[#allocation7 + $0x54] sm:$0xf0]  ;;  %v1074_v25 = vor.u32 %v1379_v20, %v1071_v22  ;;  %v1061_v26 = vld [vmem:[#allocation7 + $0xd0] sm:$0xf]  ;;  %v1361_v28 = vld [vmem:[#allocation7 + $0x54] sm:$0xf] }
  0x1e   :  { %v1378_v27 = vld [vmem:[#allocation7 + $0xd4] sm:$0xf0]  ;;  %313 = vmatpush.bf16.msra.mxu0 %v1006_v16  ;;  %v998_v29 = vor.u32 %v1362_v24, %v997_v23  ;;  %v999_v30 = vld [vmem:[#allocation7 + $0x58] sm:$0xf0]  ;;  %v1377_v31 = vld [vmem:[#allocation7 + $0xd4] sm:$0xf] }
  0x1f   :  { %v1063_v32 = vld [vmem:[#allocation7 + $0xd8] sm:$0xf0]  ;;  %327 = vmatpush.bf16.msra.mxu1 %v1070_v17  ;;  %v1062_v33 = vor.u32 %v1378_v27, %v1061_v26  ;;  %v1002_v34 = vor.u32 %v1361_v28, %v999_v30  ;;  %v989_v35 = vld [vmem:[#allocation7 + $0x40] sm:$0xf]  ;;  %v1360_v36 = vld [vmem:[#allocation7 + $0x44] sm:$0xf0] }
  0x20   :  { %341 = vmatpush.bf16.msra.mxu2 %v1010_v21  ;;  %v1053_v37 = vld [vmem:[#allocation7 + $0xc0] sm:$0xf]  ;;  %v1066_v38 = vor.u32 %v1377_v31, %v1063_v32  ;;  %v1376_v39 = vld [vmem:[#allocation7 + $0xc4] sm:$0xf0]  ;;  %v1359_v40 = vld [vmem:[#allocation7 + $0x44] sm:$0xf]  ;;  %v990_v44 = vor.u32 %v1360_v36, %v989_v35 }
  0x21   :  { %355 = vmatpush.bf16.msra.mxu3 %v1074_v25  ;;  %v991_v41 = vld [vmem:[#allocation7 + $0x48] sm:$0xf0]  ;;  %v1375_v42 = vld [vmem:[#allocation7 + $0xc4] sm:$0xf]  ;;  %v1054_v45 = vor.u32 %v1376_v39, %v1053_v37  ;;  %v981_v47 = vld [vmem:[#allocation7 + $0x30] sm:$0xf] }
  0x22   :  { %v1055_v43 = vld [vmem:[#allocation7 + $0xc8] sm:$0xf0]  ;;  %314 = vmatpush.bf16.msra.mxu0 %v998_v29  ;;  %v994_v46 = vor.u32 %v1359_v40, %v991_v41  ;;  %v1358_v48 = vld [vmem:[#allocation7 + $0x34] sm:$0xf0]  ;;  %v1045_v49 = vld [vmem:[#allocation7 + $0xb0] sm:$0xf] }
  0x23   :  { %328 = vmatpush.bf16.msra.mxu1 %v1062_v33  ;;  %v1058_v50 = vor.u32 %v1375_v42, %v1055_v43  ;;  %v1374_v51 = vld [vmem:[#allocation7 + $0xb4] sm:$0xf0]  ;;  %v1357_v52 = vld [vmem:[#allocation7 + $0x34] sm:$0xf]  ;;  %v983_v53 = vld [vmem:[#allocation7 + $0x38] sm:$0xf0]  ;;  %v982_v56 = vor.u32 %v1358_v48, %v981_v47 }
  0x24   :  { %342 = vmatpush.bf16.msra.mxu2 %v1002_v34  ;;  %v1373_v54 = vld [vmem:[#allocation7 + $0xb4] sm:$0xf]  ;;  %v1047_v55 = vld [vmem:[#allocation7 + $0xb8] sm:$0xf0]  ;;  %v1046_v57 = vor.u32 %v1374_v51, %v1045_v49  ;;  %v986_v58 = vor.u32 %v1357_v52, %v983_v53  ;;  %v973_v59 = vld [vmem:[#allocation7 + $0x20] sm:$0xf] }
  0x25   :  { %356 = vmatpush.bf16.msra.mxu3 %v1066_v38  ;;  %v1356_v60 = vld [vmem:[#allocation7 + $0x24] sm:$0xf0]  ;;  %v1037_v61 = vld [vmem:[#allocation7 + $0xa0] sm:$0xf]  ;;  %v1050_v62 = vor.u32 %v1373_v54, %v1047_v55  ;;  %v1355_v0 = vld [vmem:[#allocation7 + $0x24] sm:$0xf] }
  0x26   :  { %315 = vmatpush.bf16.msra.mxu0 %v990_v44  ;;  %v1372_v63 = vld [vmem:[#allocation7 + $0xa4] sm:$0xf0]  ;;  %v975_v1 = vld [vmem:[#allocation7 + $0x28] sm:$0xf0]  ;;  %v1371_v2 = vld [vmem:[#allocation7 + $0xa4] sm:$0xf]  ;;  %v974_v4 = vor.u32 %v1356_v60, %v973_v59 }
  0x27   :  { %329 = vmatpush.bf16.msra.mxu1 %v1054_v45  ;;  %v1039_v3 = vld [vmem:[#allocation7 + $0xa8] sm:$0xf0]  ;;  %v1038_v5 = vor.u32 %v1372_v63, %v1037_v61  ;;  %v978_v6 = vor.u32 %v1355_v0, %v975_v1  ;;  %v965_v7 = vld [vmem:[#allocation7 + $0x10] sm:$0xf]  ;;  %v1354_v8 = vld [vmem:[#allocation7 + $0x14] sm:$0xf0] }
  0x28   :  { %343 = vmatpush.bf16.msra.mxu2 %v994_v46  ;;  %v1029_v9 = vld [vmem:[#allocation7 + $0x90] sm:$0xf]  ;;  %v1042_v10 = vor.u32 %v1371_v2, %v1039_v3  ;;  %v1370_v11 = vld [vmem:[#allocation7 + $0x94] sm:$0xf0]  ;;  %v1353_v12 = vld [vmem:[#allocation7 + $0x14] sm:$0xf]  ;;  %v966_v16 = vor.u32 %v1354_v8, %v965_v7 }
  0x29   :  { %357 = vmatpush.bf16.msra.mxu3 %v1058_v50  ;;  %v967_v13 = vld [vmem:[#allocation7 + $0x18] sm:$0xf0]  ;;  %v1369_v14 = vld [vmem:[#allocation7 + $0x94] sm:$0xf]  ;;  %v957_v17 = vld [vmem:[#allocation7] sm:$0xf]  ;;  %v1030_v20 = vor.u32 %v1370_v11, %v1029_v9 }
  0x2a   :  { %316 = vmatpush.bf16.msra.mxu0 %v982_v56  ;;  %v1031_v15 = vld [vmem:[#allocation7 + $0x98] sm:$0xf0]  ;;  %v1352_v18 = vld [vmem:[#allocation7 + $0x4] sm:$0xf0]  ;;  %v1021_v19 = vld [vmem:[#allocation7 + $0x80] sm:$0xf]  ;;  %v970_v21 = vor.u32 %v1353_v12, %v967_v13 }
  0x2b   :  { %330 = vmatpush.bf16.msra.mxu1 %v1046_v57  ;;  %v1368_v22 = vld [vmem:[#allocation7 + $0x84] sm:$0xf0]  ;;  %v1351_v23 = vld [vmem:[#allocation7 + $0x4] sm:$0xf]  ;;  %v959_v24 = vld [vmem:[#allocation7 + $0x8] sm:$0xf0]  ;;  %v1034_v25 = vor.u32 %v1369_v14, %v1031_v15  ;;  %v958_v32 = vor.u32 %v1352_v18, %v957_v17 }
  0x2c   :  { %344 = vmatpush.bf16.msra.mxu2 %v986_v58  ;;  %v1367_v26 = vld [vmem:[#allocation7 + $0x84] sm:$0xf]  ;;  %v1023_v27 = vld [vmem:[#allocation7 + $0x88] sm:$0xf0]  ;;  %v1413_v29 = vld [vmem:[#allocation10 + $0xec] sm:$0xf0]  ;;  %v1022_v36 = vor.u32 %v1368_v22, %v1021_v19  ;;  %v962_v37 = vor.u32 %v1351_v23, %v959_v24 }
  0x2d   :  { %358 = vmatpush.bf16.msra.mxu3 %v1050_v62  ;;  %v1205_v28 = vld [vmem:[#allocation10 + $0xe0] sm:$0xf]  ;;  %v1445_v31 = vld [vmem:[#allocation10 + $0x1ec] sm:$0xf0]  ;;  %v1411_v33 = vld [vmem:[#allocation10 + $0xe4] sm:$0xf]  ;;  %v1026_v41 = vor.u32 %v1367_v26, %v1023_v27 }
  0x2e   :  { %317 = vmatpush.bf16.msra.mxu0 %v974_v4  ;;  %v1333_v30 = vld [vmem:[#allocation10 + $0x1e0] sm:$0xf]  ;;  %v1207_v34 = vld [vmem:[#allocation10 + $0xf0] sm:$0xf0]  ;;  %v1443_v35 = vld [vmem:[#allocation10 + $0x1e4] sm:$0xf]  ;;  %v1206_v42 = vor.u32 %v1413_v29, %v1205_v28 }
  0x2f   :  { %331 = vmatpush.bf16.msra.mxu1 %v1038_v5  ;;  %v1335_v38 = vld [vmem:[#allocation10 + $0x1f0] sm:$0xf0]  ;;  %v949_v39 = vld [vmem:[#allocation2] sm:$0xf]  ;;  %v1348_v40 = vld [vmem:[#allocation2 + $0x4] sm:$0xf0]  ;;  %v1334_v45 = vor.u32 %v1445_v31, %v1333_v30  ;;  %v1210_v46 = vor.u32 %v1411_v33, %v1207_v34 }
  0x30   :  { %345 = vmatpush.bf16.msra.mxu2 %v978_v6  ;;  %v1189_v43 = vld [vmem:[#allocation10 + $0xc0] sm:$0xf]  ;;  %v1409_v44 = vld [vmem:[#allocation10 + $0xcc] sm:$0xf0]  ;;  %v951_v49 = vld [vmem:[#allocation2 + $0x8] sm:$0xf0]  ;;  %v1338_v50 = vor.u32 %v1443_v35, %v1335_v38  ;;  %v950_v54 = vor.u32 %v1348_v40, %v949_v39 }
  0x31   :  { %359 = vmatpush.bf16.msra.mxu3 %v1042_v10  ;;  %v1317_v47 = vld [vmem:[#allocation10 + $0x1c0] sm:$0xf]  ;;  %v1441_v51 = vld [vmem:[#allocation10 + $0x1cc] sm:$0xf0]  ;;  %v1407_v52 = vld [vmem:[#allocation10 + $0xc4] sm:$0xf]  ;;  %v1190_v58 = vor.u32 %v1409_v44, %v1189_v43 }
  0x32   :  { %318 = vmatpush.bf16.msra.mxu0 %v966_v16  ;;  %v1347_v48 = vld [vmem:[#allocation2 + $0x4] sm:$0xf]  ;;  %v1191_v53 = vld [vmem:[#allocation10 + $0xd0] sm:$0xf0]  ;;  %v1318_v59 = vor.u32 %v1441_v51, %v1317_v47  ;;  %v1405_v62 = vld [vmem:[#allocation10 + $0xac] sm:$0xf0] }
  0x33   :  { %332 = vmatpush.bf16.msra.mxu1 %v1030_v20  ;;  %v1439_v55 = vld [vmem:[#allocation10 + $0x1c4] sm:$0xf]  ;;  %v1319_v56 = vld [vmem:[#allocation10 + $0x1d0] sm:$0xf0]  ;;  %v954_v57 = vor.u32 %v1347_v48, %v951_v49  ;;  %v1194_v60 = vor.u32 %v1407_v52, %v1191_v53  ;;  %v1173_v61 = vld [vmem:[#allocation10 + $0xa0] sm:$0xf] }
  0x34   :  { %346 = vmatpush.bf16.msra.mxu2 %v970_v21  ;;  %v1301_v63 = vld [vmem:[#allocation10 + $0x1a0] sm:$0xf]  ;;  %v1322_v0 = vor.u32 %v1439_v55, %v1319_v56  ;;  %v1437_v1 = vld [vmem:[#allocation10 + $0x1ac] sm:$0xf0]  ;;  %v1403_v2 = vld [vmem:[#allocation10 + $0xa4] sm:$0xf]  ;;  %v1174_v6 = vor.u32 %v1405_v62, %v1173_v61 }
  0x35   :  { %360 = vmatpush.bf16.msra.mxu3 %v1034_v25  ;;  %v1175_v3 = vld [vmem:[#allocation10 + $0xb0] sm:$0xf0]  ;;  %v1435_v4 = vld [vmem:[#allocation10 + $0x1a4] sm:$0xf]  ;;  %v1302_v7 = vor.u32 %v1437_v1, %v1301_v63  ;;  %v1157_v9 = vld [vmem:[#allocation10 + $0x80] sm:$0xf] }
  0x36   :  { %319 = vmatpush.bf16.msra.mxu0 %v958_v32  ;;  %v1303_v5 = vld [vmem:[#allocation10 + $0x1b0] sm:$0xf0]  ;;  %v1178_v8 = vor.u32 %v1403_v2, %v1175_v3  ;;  %v1401_v10 = vld [vmem:[#allocation10 + $0x8c] sm:$0xf0]  ;;  %v1285_v11 = vld [vmem:[#allocation10 + $0x180] sm:$0xf] }
  0x37   :  { %333 = vmatpush.bf16.msra.mxu1 %v1022_v36  ;;  %v1306_v12 = vor.u32 %v1435_v4, %v1303_v5  ;;  %v1433_v13 = vld [vmem:[#allocation10 + $0x18c] sm:$0xf0]  ;;  %v1399_v14 = vld [vmem:[#allocation10 + $0x84] sm:$0xf]  ;;  %v1159_v15 = vld [vmem:[#allocation10 + $0x90] sm:$0xf0]  ;;  %v1158_v18 = vor.u32 %v1401_v10, %v1157_v9 }
  0x38   :  { %347 = vmatpush.bf16.msra.mxu2 %v962_v37  ;;  %v1431_v16 = vld [vmem:[#allocation10 + $0x184] sm:$0xf]  ;;  %v1287_v17 = vld [vmem:[#allocation10 + $0x190] sm:$0xf0]  ;;  %v1286_v19 = vor.u32 %v1433_v13, %v1285_v11  ;;  %v1162_v20 = vor.u32 %v1399_v14, %v1159_v15  ;;  %v1141_v21 = vld [vmem:[#allocation10 + $0x60] sm:$0xf] }
  0x39   :  { %361 = vmatpush.bf16.msra.mxu3 %v1026_v41  ;;  %320 = vmatmul.bf16.vlgmr.msra.gmra.mxu0 %v950_v54  ;;  %v1397_v22 = vld [vmem:[#allocation10 + $0x6c] sm:$0xf0]  ;;  %v1269_v23 = vld [vmem:[#allocation10 + $0x160] sm:$0xf]  ;;  %v1290_v24 = vor.u32 %v1431_v16, %v1287_v17  ;;  %v1395_v26 = vld [vmem:[#allocation10 + $0x64] sm:$0xf] }
  0x3a   :  { %772 = vmatpush.bf16.msrb.mxu0 %v1206_v42  ;;  %334 = vmatmul.bf16.vlgmr.msra.gmra.mxu1 %v954_v57  ;;  %v1429_v25 = vld [vmem:[#allocation10 + $0x16c] sm:$0xf0]  ;;  %v1143_v27 = vld [vmem:[#allocation10 + $0x70] sm:$0xf0]  ;;  %v1427_v28 = vld [vmem:[#allocation10 + $0x164] sm:$0xf]  ;;  %v1142_v30 = vor.u32 %v1397_v22, %v1141_v21 }
  0x3b   :  { %786 = vmatpush.bf16.msrb.mxu1 %v1334_v45  ;;  %348 = vmatmul.bf16.vlgmr.msra.gmra.mxu2 %v950_v54  ;;  %v1271_v29 = vld [vmem:[#allocation10 + $0x170] sm:$0xf0]  ;;  %v1270_v31 = vor.u32 %v1429_v25, %v1269_v23  ;;  %v1146_v32 = vor.u32 %v1395_v26, %v1143_v27  ;;  %v1125_v33 = vld [vmem:[#allocation10 + $0x40] sm:$0xf]  ;;  %v1393_v34 = vld [vmem:[#allocation10 + $0x4c] sm:$0xf0] }
  0x3c   :  { %800 = vmatpush.bf16.msrb.mxu2 %v1210_v46  ;;  %362 = vmatmul.bf16.vlgmr.msra.gmra.mxu3 %v954_v57  ;;  %v1253_v35 = vld [vmem:[#allocation10 + $0x140] sm:$0xf]  ;;  %v1274_v36 = vor.u32 %v1427_v28, %v1271_v29  ;;  %v1425_v37 = vld [vmem:[#allocation10 + $0x14c] sm:$0xf0]  ;;  %v1391_v38 = vld [vmem:[#allocation10 + $0x44] sm:$0xf]  ;;  %v1126_v42 = vor.u32 %v1393_v34, %v1125_v33 }
  0x3d   :  { %814 = vmatpush.bf16.msrb.mxu3 %v1338_v50  ;;  %v1127_v39 = vld [vmem:[#allocation10 + $0x50] sm:$0xf0]  ;;  %v1423_v40 = vld [vmem:[#allocation10 + $0x144] sm:$0xf]  ;;  %v1254_v43 = vor.u32 %v1425_v37, %v1253_v35  ;;  %v1109_v45 = vld [vmem:[#allocation10 + $0x20] sm:$0xf] }
  0x3e   :  { %773 = vmatpush.bf16.msrb.mxu0 %v1190_v58  ;;  %v1255_v41 = vld [vmem:[#allocation10 + $0x150] sm:$0xf0]  ;;  %v1130_v44 = vor.u32 %v1391_v38, %v1127_v39  ;;  %v1389_v46 = vld [vmem:[#allocation10 + $0x2c] sm:$0xf0]  ;;  %v1237_v47 = vld [vmem:[#allocation10 + $0x120] sm:$0xf] }
  0x3f   :  { %787 = vmatpush.bf16.msrb.mxu1 %v1318_v59  ;;  %v1258_v48 = vor.u32 %v1423_v40, %v1255_v41  ;;  %v1421_v49 = vld [vmem:[#allocation10 + $0x12c] sm:$0xf0]  ;;  %v1387_v50 = vld [vmem:[#allocation10 + $0x24] sm:$0xf]  ;;  %v1111_v51 = vld [vmem:[#allocation10 + $0x30] sm:$0xf0]  ;;  %v1110_v54 = vor.u32 %v1389_v46, %v1109_v45 }
  0x40   :  { %801 = vmatpush.bf16.msrb.mxu2 %v1194_v60  ;;  %v1419_v52 = vld [vmem:[#allocation10 + $0x124] sm:$0xf]  ;;  %v1239_v53 = vld [vmem:[#allocation10 + $0x130] sm:$0xf0]  ;;  %v1238_v55 = vor.u32 %v1421_v49, %v1237_v47  ;;  %v1114_v56 = vor.u32 %v1387_v50, %v1111_v51  ;;  %v1093_v57 = vld [vmem:[#allocation10] sm:$0xf] }
  0x41   :  { %815 = vmatpush.bf16.msrb.mxu3 %v1322_v0  ;;  %v1385_v58 = vld [vmem:[#allocation10 + $0xc] sm:$0xf0]  ;;  %v1221_v59 = vld [vmem:[#allocation10 + $0x100] sm:$0xf]  ;;  %v1242_v60 = vor.u32 %v1419_v52, %v1239_v53  ;;  %v1383_v62 = vld [vmem:[#allocation10 + $0x4] sm:$0xf] }
  0x42   :  { %774 = vmatpush.bf16.msrb.mxu0 %v1174_v6  ;;  %v1417_v61 = vld [vmem:[#allocation10 + $0x10c] sm:$0xf0]  ;;  %v1095_v63 = vld [vmem:[#allocation10 + $0x10] sm:$0xf0]  ;;  %v1415_v0 = vld [vmem:[#allocation10 + $0x104] sm:$0xf]  ;;  %v1094_v2 = vor.u32 %v1385_v58, %v1093_v57 }
  0x43   :  { %788 = vmatpush.bf16.msrb.mxu1 %v1302_v7  ;;  %v1223_v1 = vld [vmem:[#allocation10 + $0x110] sm:$0xf0]  ;;  %v1085_v3 = vld [vmem:[#allocation5] sm:$0xf]  ;;  %v1222_v5 = vor.u32 %v1417_v61, %v1221_v59  ;;  %v1098_v6 = vor.u32 %v1383_v62, %v1095_v63  ;;  %v1343_v21 = vld [vmem:[#allocation10 + $0x1f8] sm:$0xf0] }
  0x44   :  { %802 = vmatpush.bf16.msrb.mxu2 %v1178_v8  ;;  %v1350_v4 = vld [vmem:[#allocation5 + $0x4] sm:$0xf0]  ;;  %v1349_v7 = vld [vmem:[#allocation5 + $0x4] sm:$0xf]  ;;  %v1087_v8 = vld [vmem:[#allocation5 + $0x8] sm:$0xf0]  ;;  %v1226_v9 = vor.u32 %v1415_v0, %v1223_v1 }
  0x45   :  { %816 = vmatpush.bf16.msrb.mxu3 %v1306_v12  ;;  %v1684_v10 = vor.u32 %v1350_v4, %v1085_v3  ;;  %v1686_v11 = vor.u32 %v1349_v7, %v1087_v8  ;;  %v1412_v17 = vld [vmem:[#allocation10 + $0xec] sm:$0xf]  ;;  %v1199_v23 = vld [vmem:[#allocation10 + $0xd8] sm:$0xf0]  ;;  %v1213_v26 = vld [vmem:[#allocation10 + $0xe8] sm:$0xf] }
  0x46   :  { %775 = vmatpush.bf16.msrb.mxu0 %v1158_v18  ;;  %v1215_v18 = vld [vmem:[#allocation10 + $0xf8] sm:$0xf0]  ;;  %v1408_v22 = vld [vmem:[#allocation10 + $0xcc] sm:$0xf]  ;;  %v1414_v27 = vld [vmem:[#allocation10 + $0xf4] sm:$0xf0] }
  0x47   :  { %789 = vmatpush.bf16.msrb.mxu1 %v1286_v19  ;;  %v1444_v19 = vld [vmem:[#allocation10 + $0x1ec] sm:$0xf]  ;;  %v1341_v33 = vld [vmem:[#allocation10 + $0x1e8] sm:$0xf]  ;;  %v1446_v34 = vld [vmem:[#allocation10 + $0x1f4] sm:$0xf0] }
  0x48   :  { %803 = vmatpush.bf16.msrb.mxu2 %v1162_v20  ;;  %v1218_v20 = vor.u32 %v1412_v17, %v1215_v18  ;;  %v1346_v25 = vor.u32 %v1444_v19, %v1343_v21  ;;  %v1440_v28 = vld [vmem:[#allocation10 + $0x1cc] sm:$0xf]  ;;  %v1183_v38 = vld [vmem:[#allocation10 + $0xb8] sm:$0xf0]  ;;  %v1197_v39 = vld [vmem:[#allocation10 + $0xc8] sm:$0xf] }
  0x49   :  { %817 = vmatpush.bf16.msrb.mxu3 %v1290_v24  ;;  %v1705_v24 = vld [vmem:[%s1768_s5] sm:$0xf]  ;;  %v1404_v37 = vld [vmem:[#allocation10 + $0xac] sm:$0xf]  ;;  %v1410_v40 = vld [vmem:[#allocation10 + $0xd4] sm:$0xf0] }
  0x4a   :  { %776 = vmatpush.bf16.msrb.mxu0 %v1142_v30  ;;  %v1202_v30 = vor.u32 %v1408_v22, %v1199_v23  ;;  %v1436_v41 = vld [vmem:[#allocation10 + $0x1ac] sm:$0xf]  ;;  %v1325_v45 = vld [vmem:[#allocation10 + $0x1c8] sm:$0xf]  ;;  %v1442_v46 = vld [vmem:[#allocation10 + $0x1d4] sm:$0xf0]  ;;  %v1186_v49 = vor.u32 %v1404_v37, %v1183_v38 }
  0x4b   :  { %790 = vmatpush.bf16.msrb.mxu1 %v1270_v31  ;;  %v1214_v31 = vor.u32 %v1414_v27, %v1213_v26  ;;  %v1326_v50 = vor.u32 %v1442_v46, %v1325_v45  ;;  %v1181_v51 = vld [vmem:[#allocation10 + $0xa8] sm:$0xf]  ;;  %v1406_v52 = vld [vmem:[#allocation10 + $0xb4] sm:$0xf0]  ;;  %v1167_v57 = vld [vmem:[#allocation10 + $0x98] sm:$0xf0] }
  0x4c   :  { %804 = vmatpush.bf16.msrb.mxu2 %v1146_v32  ;;  %v1327_v32 = vld [vmem:[#allocation10 + $0x1d8] sm:$0xf0]  ;;  %v1309_v58 = vld [vmem:[#allocation10 + $0x1a8] sm:$0xf]  ;;  %v1182_v59 = vor.u32 %v1406_v52, %v1181_v51  ;;  %v1438_v62 = vld [vmem:[#allocation10 + $0x1b4] sm:$0xf0] }
  0x4d   :  { %818 = vmatpush.bf16.msrb.mxu3 %v1274_v36  ;;  %v1330_v35 = vor.u32 %v1440_v28, %v1327_v32  ;;  %v1342_v36 = vor.u32 %v1446_v34, %v1341_v33  ;;  %v1295_v61 = vld [vmem:[#allocation10 + $0x198] sm:$0xf0]  ;;  %v1310_v1 = vor.u32 %v1438_v62, %v1309_v58  ;;  %v1402_v3 = vld [vmem:[#allocation10 + $0x94] sm:$0xf0]  ;;  %v435_v8 = vperm.slane %v1705_v24, 1  ;;  %s1630_s5 = smov [#allocation11]  }
  0x4e   :  { %777 = vmatpush.bf16.msrb.mxu0 %v1126_v42  ;;  %v1311_v42 = vld [vmem:[#allocation10 + $0x1b8] sm:$0xf0]  ;;  %v1396_v17 = vld [vmem:[#allocation10 + $0x6c] sm:$0xf]  ;;  %v1149_v27 = vld [vmem:[#allocation10 + $0x68] sm:$0xf] }
  0x4f   :  { %791 = vmatpush.bf16.msrb.mxu1 %v1254_v43  ;;  %v1709_v43 = vld [vmem:[#allocation8] sm:$0x3]  ;;  %v1428_v21 = vld [vmem:[#allocation10 + $0x16c] sm:$0xf]  ;;  %v1398_v28 = vld [vmem:[#allocation10 + $0x74] sm:$0xf0] }
  0x50   :  { %805 = vmatpush.bf16.msrb.mxu2 %v1130_v44  ;;  %v1198_v44 = vor.u32 %v1410_v40, %v1197_v39  ;;  %v138_v63 = vperm.slane %v1709_v43, 0  ;;  %v139_v0 = vperm.slane %v1709_v43, 1  ;;  %v1151_v18 = vld [vmem:[#allocation10 + $0x78] sm:$0xf0]  ;;  %v1277_v32 = vld [vmem:[#allocation10 + $0x168] sm:$0xf] }
  0x51   :  { %819 = vmatpush.bf16.msrb.mxu3 %v1258_v48  ;;  %v434_v48 = vperm.slane %v1705_v24, 0  ;;  %v1279_v22 = vld [vmem:[#allocation10 + $0x178] sm:$0xf0]  ;;  %v1430_v33 = vld [vmem:[#allocation10 + $0x174] sm:$0xf0]  ;;  %s930_s23 = sshll.u32 %s1630_s5, 4  ;;  %s931_s23 = int_to_ptr.vmem [resolvable:$true] %s930_s23 }
  0x52   :  { %778 = vmatpush.bf16.msrb.mxu0 %v1110_v54  ;;  %v1392_v37 = vld [vmem:[#allocation10 + $0x4c] sm:$0xf]  ;;  %v1135_v38 = vld [vmem:[#allocation10 + $0x58] sm:$0xf0]  ;;  %v1278_v46 = vor.u32 %v1430_v33, %v1277_v32  ;;  %v1261_v52 = vld [vmem:[#allocation10 + $0x148] sm:$0xf] }
  0x53   :  { %792 = vmatpush.bf16.msrb.mxu1 %v1238_v55  ;;  %v1314_v55 = vor.u32 %v1436_v41, %v1311_v42  ;;  %v1424_v40 = vld [vmem:[#allocation10 + $0x14c] sm:$0xf]  ;;  %v1263_v41 = vld [vmem:[#allocation10 + $0x158] sm:$0xf0]  ;;  %v1138_v51 = vor.u32 %v1392_v37, %v1135_v38  ;;  %s932_s26 = sshll.u32 %s1769_s6, 4  ;;  %s933_s26 = int_to_ptr.hbm [resolvable:$true] %s932_s26 }
  0x54   :  { %806 = vmatpush.bf16.msrb.mxu2 %v1114_v56  ;;  %v1400_v56 = vld [vmem:[#allocation10 + $0x8c] sm:$0xf] }
  0x55   :  { %820 = vmatpush.bf16.msrb.mxu3 %v1242_v60  ;;  %v1432_v60 = vld [vmem:[#allocation10 + $0x18c] sm:$0xf]  ;;  %v1170_v4 = vor.u32 %v1400_v56, %v1167_v57 }
  0x56   :  { %779 = vmatpush.bf16.msrb.mxu0 %v1094_v2  ;;  %v1165_v2 = vld [vmem:[#allocation10 + $0x88] sm:$0xf]  ;;  %v1388_v58 = vld [vmem:[#allocation10 + $0x2c] sm:$0xf] }
  0x57   :  { %793 = vmatpush.bf16.msrb.mxu1 %v1222_v5  ;;  %v1293_v5 = vld [vmem:[#allocation10 + $0x188] sm:$0xf] }
  0x58   :  { %807 = vmatpush.bf16.msrb.mxu2 %v1098_v6  ;;  %v1434_v6 = vld [vmem:[#allocation10 + $0x194] sm:$0xf0] }
  0x59   :  { %821 = vmatpush.bf16.msrb.mxu3 %v1226_v9  ;;  %780 = vmatmul.bf16.vlgmr.msrb.gmra.mxu0 %v1684_v10  ;;  %v1298_v9 = vor.u32 %v1432_v60, %v1295_v61  ;;  %v1294_v26 = vor.u32 %v1434_v6, %v1293_v5  ;;  %v1420_v60 = vld [vmem:[#allocation10 + $0x12c] sm:$0xf]  ;;  %v1247_v61 = vld [vmem:[#allocation10 + $0x138] sm:$0xf0] }
  0x5a   :  { %794 = vmatmul.bf16.vlgmr.msrb.gmra.mxu1 %v1686_v11  ;;  %828 = vmatpush.bf16.msra.mxu0 %v1214_v31  ;;  %v1154_v31 = vor.u32 %v1396_v17, %v1151_v18  ;;  %v1422_v17 = vld [vmem:[#allocation10 + $0x134] sm:$0xf0]  ;;  %v1250_v43 = vor.u32 %v1420_v60, %v1247_v61 }
  0x5b   :  { %808 = vmatmul.bf16.vlgmr.msrb.gmra.mxu2 %v1684_v10  ;;  %842 = vmatpush.bf16.msra.mxu1 %v1342_v36 }
  0x5c   :  { %822 = vmatmul.bf16.vlgmr.msrb.gmra.mxu3 %v1686_v11  ;;  %856 = vmatpush.bf16.msra.mxu2 %v1218_v20  ;;  %v1166_v20 = vor.u32 %v1402_v3, %v1165_v2  ;;  %v1117_v3 = vld [vmem:[#allocation10 + $0x28] sm:$0xf] }
  0x5d   :  { %870 = vmatpush.bf16.msra.mxu3 %v1346_v25 }
  0x5e   :  { %829 = vmatpush.bf16.msra.mxu0 %v1198_v44 }
  0x5f   :  { %843 = vmatpush.bf16.msra.mxu1 %v1326_v50  ;;  %v1394_v50 = vld [vmem:[#allocation10 + $0x54] sm:$0xf0] }
  0x60   :  { %857 = vmatpush.bf16.msra.mxu2 %v1202_v30 }
  0x61   :  { %871 = vmatpush.bf16.msra.mxu3 %v1330_v35 }
  0x62   :  { %830 = vmatpush.bf16.msra.mxu0 %v1182_v59 }
  0x63   :  { %844 = vmatpush.bf16.msra.mxu1 %v1310_v1 }
  0x64   :  { %858 = vmatpush.bf16.msra.mxu2 %v1186_v49  ;;  %v1133_v49 = vld [vmem:[#allocation10 + $0x48] sm:$0xf] }
  0x65   :  { %872 = vmatpush.bf16.msra.mxu3 %v1314_v55  ;;  %v1134_v59 = vor.u32 %v1394_v50, %v1133_v49 }
  0x66   :  { %831 = vmatpush.bf16.msra.mxu0 %v1166_v20  ;;  %v1416_v20 = vld [vmem:[#allocation10 + $0x10c] sm:$0xf] }
  0x67   :  { %845 = vmatpush.bf16.msra.mxu1 %v1294_v26 }
  0x68   :  { %859 = vmatpush.bf16.msra.mxu2 %v1170_v4  ;;  %v1390_v4 = vld [vmem:[#allocation10 + $0x34] sm:$0xf0] }
  0x69   :  { %873 = vmatpush.bf16.msra.mxu3 %v1298_v9  ;;  %v1245_v9 = vld [vmem:[#allocation10 + $0x128] sm:$0xf] }
  0x6a   :  { %v1246_v26 = vor.u32 %v1422_v17, %v1245_v9 }
  0x6b   :  { %846 = vmatpush.bf16.msra.mxu1 %v1278_v46 }
  0x6c   :  { %860 = vmatpush.bf16.msra.mxu2 %v1154_v31  ;;  %v1418_v31 = vld [vmem:[#allocation10 + $0x114] sm:$0xf0] }
  0x70   :  { %861 = vmatpush.bf16.msra.mxu2 %v1138_v51  ;;  %v436_v51 = vperm.slane %v1705_v24, 2 }
  0xb6   :  { %v1692_v12 = vpop.f32.mrf.mxu0 }
  0xb7   :  { %v1694_v13 = vpop.f32.mrf.mxu1  ;;  %v322_v23 = vadd.f32 %v1692_v12, %v138_v63  ;;  %v1282_v12 = vor.u32 %v1428_v21, %v1279_v22  ;;  %v1231_v21 = vld [vmem:[#allocation10 + $0x118] sm:$0xf0] }
  0xb9   :  { %v336_v42 = vadd.f32 %v1694_v13, %v322_v23  ;;  %874 = vmatpush.bf16.msra.mxu3 %v1282_v12  ;;  %v1266_v13 = vor.u32 %v1424_v40, %v1263_v41 }
  0xbd   :  { %875 = vmatpush.bf16.msra.mxu3 %v1266_v13 }
  0xbe   :  { %v1696_v14 = vpop.f32.mrf.mxu2  ;;  %v1700_v16 = vpop.f32.mrf.mxu0 }
  0xbf   :  { %v1698_v15 = vpop.f32.mrf.mxu3  ;;  %v1707_v29 = vpop.f32.mrf.mxu1  ;;  %v350_v25 = vadd.f32 %v1696_v14, %v139_v0  ;;  %v1150_v14 = vor.u32 %v1398_v28, %v1149_v27  ;;  %v324_v62 = vadd.f32 %v1700_v16, %v138_v63  ;;  %v1103_v63 = vld [vmem:[#allocation10 + $0x18] sm:$0xf0]  ;;  %v1101_v27 = vld [vmem:[#allocation10 + $0x8] sm:$0xf]  ;;  %v1386_v28 = vld [vmem:[#allocation10 + $0x14] sm:$0xf0] }
  0xc1   :  { %v364_v44 = vadd.f32 %v1698_v15, %v350_v25  ;;  %v1119_v15 = vld [vmem:[#allocation10 + $0x38] sm:$0xf0]  ;;  %832 = vmatpush.bf16.msra.mxu0 %v1150_v14  ;;  %v338_v22 = vadd.f32 %v1707_v29, %v324_v62  ;;  %876 = vmatpush.bf16.msra.mxu3 %v1250_v43 }
  0xc5   :  { %833 = vmatpush.bf16.msra.mxu0 %v1134_v59 }
  0xc6   :  { %v1711_v47 = vpop.f32.mrf.mxu2 }
  0xc7   :  { %v1714_v53 = vpop.f32.mrf.mxu3 }
  0xd6   :  { %v781_v54 = vpop.f32.mrf.mxu0 }
  0xd7   :  { %v782_v7 = vadd.f32 %v781_v54, %v434_v48  ;;  %v795_v19 = vpop.f32.mrf.mxu1  ;;  %v1426_v54 = vld [vmem:[#allocation10 + $0x154] sm:$0xf0] }
  0xd8   :  { %v1262_v2 = vor.u32 %v1426_v54, %v1261_v52  ;;  %v437_v52 = vperm.slane %v1705_v24, 3 }
  0xd9   :  { %v796_v34 = vadd.f32 %v795_v19, %v782_v7  ;;  %v1122_v7 = vor.u32 %v1388_v58, %v1119_v15  ;;  %v1118_v19 = vor.u32 %v1390_v4, %v1117_v3 }
  0xda   :  { %847 = vmatpush.bf16.msra.mxu1 %v1262_v2 }
  0xdb   :  { %v1733_v56 = vmul.f32 %v796_v34, %v336_v42  ;;  %862 = vmatpush.bf16.msra.mxu2 %v1122_v7  ;;  %v1234_v34 = vor.u32 %v1416_v20, %v1231_v21  ;;  %834 = vmatpush.bf16.msra.mxu0 %v1118_v19 }
  0xdd   :  { %877 = vmatpush.bf16.msra.mxu3 %v1234_v34 }
  0xde   :  { %v809_v30 = vpop.f32.mrf.mxu2  ;;  %v783_v39 = vpop.f32.mrf.mxu0  ;;  %848 = vmatpush.bf16.msra.mxu1 %v1246_v26 }
  0xdf   :  { %v810_v35 = vadd.f32 %v809_v30, %v435_v8  ;;  %v823_v36 = vpop.f32.mrf.mxu3  ;;  %v784_v55 = vadd.f32 %v783_v39, %v434_v48  ;;  %v352_v48 = vadd.f32 %v1711_v47, %v139_v0  ;;  %v797_v5 = vpop.f32.mrf.mxu1  ;;  %v1384_v47 = vld [vmem:[#allocation10 + $0xc] sm:$0xf]  ;;  %v1229_v30 = vld [vmem:[#allocation10 + $0x108] sm:$0xf] }
  0xe0   :  { %v1230_v29 = vor.u32 %v1418_v31, %v1229_v30  ;;  %878 = vmatmul.bf16.vlgmr.msra.gmra.mxu3 %v1686_v11 }
  0xe1   :  { %v824_v45 = vadd.f32 %v823_v36, %v810_v35  ;;  %v798_v18 = vadd.f32 %v797_v5, %v784_v55  ;;  %v366_v23 = vadd.f32 %v1714_v53, %v352_v48  ;;  %v1102_v35 = vor.u32 %v1386_v28, %v1101_v27 }
  0xe2   :  { %849 = vmatpush.bf16.msra.mxu1 %v1230_v29 }
  0xe3   :  { %v1735_v57 = vmul.f32 %v824_v45, %v364_v44  ;;  %v886_v32 = vmul.f32 %v798_v18, %v338_v22  ;;  %835 = vmatpush.bf16.msra.mxu0 %v1102_v35 }
  0xe5   :  { %v888_v1 = vmax.f32 %v1733_v56, %v1735_v57  ;;  %850 = vmatmul.bf16.vlgmr.msra.gmra.mxu1 %v1686_v11 }
  0xe6   :  { %v811_v6 = vpop.f32.mrf.mxu2  ;;  %836 = vmatmul.bf16.vlgmr.msra.gmra.mxu0 %v1684_v10 }
  0xe7   :  { %v812_v16 = vadd.f32 %v811_v6, %v435_v8  ;;  %889 = vmax.xlane.f32.xlu0 %v888_v1  ;;  %v825_v0 = vpop.f32.mrf.mxu3  ;;  %v1106_v8 = vor.u32 %v1384_v47, %v1103_v63 }
  0xe9   :  { %v826_v25 = vadd.f32 %v825_v0, %v812_v16  ;;  %863 = vmatpush.bf16.msra.mxu2 %v1106_v8 }
  0xeb   :  { %v887_v33 = vmul.f32 %v826_v25, %v366_v23 }
  0xec   :  { %864 = vmatmul.bf16.vlgmr.msra.gmra.mxu2 %v1684_v10 }
  0xed   :  { %v891_v36 = vmax.f32 %v886_v32, %v887_v33 }
  0xef   :  { %892 = vmax.xlane.f32.xlu0 %v891_v36 }
 0x15a   :  { %v890_v53 = vpop.xlane.xlu0 %889 }
 0x15b   :  { %v894_v12 = vsub.f32 %v1733_v56, %v890_v53  ;;  %v895_v37 = vsub.f32 %v1735_v57, %v890_v53 }
 0x15d   :  { %v898_v38 = vmul.f32 1.442695, %v894_v12  ;;  %v900_v39 = vmul.f32 1.442695, %v895_v37 }
 0x15f   :  { %1457 = vpow2.f32 %v898_v38 }
 0x160   :  { %1459 = vpow2.f32 %v900_v39 }
 0x162   :  { %v893_v14 = vpop.xlane.xlu0 %892  ;;  %v851_v58 = vpop.f32.mrf.mxu1 }
 0x163   :  { %v896_v40 = vsub.f32 %v886_v32, %v893_v14  ;;  %v897_v41 = vsub.f32 %v887_v33, %v893_v14  ;;  %v837_v54 = vpop.f32.mrf.mxu0  ;;  %v879_v15 = vpop.f32.mrf.mxu3 }
 0x164   :  { %v838_v57 = vadd.f32 %v837_v54, %v436_v51 }
 0x165   :  { %v1458_v42 = vpop.eup %1457  ;;  %v902_v44 = vmul.f32 1.442695, %v896_v40  ;;  %v904_v45 = vmul.f32 1.442695, %v897_v41 }
 0x166   :  { %v1460_v46 = vpop.eup %1459  ;;  %v852_v59 = vadd.f32 %v851_v58, %v838_v57 }
 0x167   :  { %1461 = vpow2.f32 %v902_v44  ;;  %v906_v10 = vadd.f32 %v1460_v46, %v1458_v42 }
 0x168   :  { %1463 = vpow2.f32 %v904_v45 }
 0x169   :  { %907 = vadd.xlane.f32.xlu1 %v906_v10 }
 0x16a   :  { %v853_v7 = vpop.f32.mrf.mxu1 }
 0x16b   :  { %v839_v2 = vpop.f32.mrf.mxu0  ;;  %v881_v9 = vpop.f32.mrf.mxu3 }
 0x16c   :  { %v840_v24 = vadd.f32 %v839_v2, %v436_v51 }
 0x16d   :  { %v1462_v11 = vpop.eup %1461 }
 0x16e   :  { %v1464_v49 = vpop.eup %1463  ;;  %v854_v18 = vadd.f32 %v853_v7, %v840_v24 }
 0x16f   :  { %v909_v50 = vadd.f32 %v1464_v49, %v1462_v11  ;;  %v865_v55 = vpop.f32.mrf.mxu2 }
 0x170   :  { %v866_v13 = vadd.f32 %v865_v55, %v437_v52 }
 0x171   :  { %910 = vadd.xlane.f32.xlu1 %v909_v50 }
 0x172   :  { %v880_v60 = vadd.f32 %v879_v15, %v866_v13 }
 0x177   :  { %v867_v3 = vpop.f32.mrf.mxu2 }
 0x178   :  { %v868_v6 = vadd.f32 %v867_v3, %v437_v52 }
 0x17a   :  { %v882_v16 = vadd.f32 %v881_v9, %v868_v6 }
 0x1dc   :  { %v908_v56 = vpop.xlane.xlu1 %907 }
 0x1dd   :  { %1465 = vrcp.f32 %v908_v56 }
 0x1e3   :  { %v1466_v61 = vpop.eup %1465 }
 0x1e4   :  { %v914_v62 = vmul.f32 %v1466_v61, %v1458_v42  ;;  %v915_v48 = vmul.f32 %v1466_v61, %v1460_v46  ;;  %v911_v1 = vpop.xlane.xlu1 %910 }
 0x1e5   :  { %1467 = vrcp.f32 %v911_v1 }
 0x1e6   :  { %v918_v4 = vmul.f32 %v914_v62, %v852_v59  ;;  %v919_v5 = vmul.f32 %v915_v48, %v880_v60 }
 0x1e8   :  { %922 = vst [vmem:[#allocation11] sm:$0xff] %v918_v4 }
 0x1e9   :  { %923 = vst [vmem:[#allocation11 + $0x8] sm:$0xff] %v919_v5 }
 0x1eb   :  { %v1468_v17 = vpop.eup %1467 }
 0x1ec   :  { %v916_v43 = vmul.f32 %v1468_v17, %v1462_v11  ;;  %v917_v47 = vmul.f32 %v1468_v17, %v1464_v49 }
 0x1ee   :  { %v920_v63 = vmul.f32 %v916_v43, %v854_v18  ;;  %v921_v0 = vmul.f32 %v917_v47, %v882_v16 }
 0x1f0   :  { %924 = vst [vmem:[#allocation11 + $0x10] sm:$0xff] %v920_v63 }
 0x1f1   :  { %925 = vst [vmem:[#allocation11 + $0x18] sm:$0xff] %v921_v0 }
 0x1f2   :  { %938 = dma.vmem_to_hbm [thread:$0]  %s931_s23, 512, %s933_s26, [#allocation4], %s1628_s21, %s1628_s21, %s1629_s22  }
 0x1f3   :  { %1619 = dma.done.wait [#allocation4], 512  }
 0x1f4   :  { %1620 = vsyncadd [#allocation4], 4294966784 }
 0x1f5   :  { %943 = vsyncpa [#allocation3], 1 }
 0x1f6   :  { %944 = vsyncpa [#allocation6], 1 }
 0x1f7   :  { %945 = vsyncpa [#allocation9], 1 }
 0x1f8   :  { %946 = vsyncpa [#allocation4], 1 }

</bundles_post_ra>
